<compile_context>
chip_gen: v5e
topology: v5e:2x2
jax: 0.10.0
libtpu: 0.0.40
codegen_flags: <defaults>
</compile_context>

<pallas_src>
import functools

import jax
import jax.numpy as jnp
from jax.experimental import pallas as pl
from jax.experimental.pallas import tpu as pltpu


def _attn_pool_kernel(x_ref, w_ref, o_ref, m_sc, l_sc, acc_sc, *,
                      seq_len, needs_seq_mask):
    # x_ref : (TB, TS, D)  token-embedding tile, native dtype
    # w_ref : (1, 1, D)    query weight, already cast to x.dtype (wrapper)
    # o_ref : (TB, 1, D)   pooled output (written on the last seq step)
    # m_sc  : (TB, 1, 1)   running max (f32)
    # l_sc  : (TB, 1, 1)   running softmax denominator (f32)
    # acc_sc: (TB, 1, D)   running weighted sum (f32)
    s_idx = pl.program_id(1)

    @pl.when(s_idx == 0)
    def _init():
        m_sc[...] = jnp.full(m_sc.shape, -jnp.inf, dtype=m_sc.dtype)
        l_sc[...] = jnp.zeros(l_sc.shape, dtype=l_sc.dtype)
        acc_sc[...] = jnp.zeros(acc_sc.shape, dtype=acc_sc.dtype)

    x = x_ref[...]                                   # (TB, TS, D)
    tb, ts, d = x.shape

    if needs_seq_mask:
        # Last sequence tile is partial: zero padded rows of x so stale /
        # non-finite VMEM contents can never reach the pooling matmul.
        base = s_idx * ts
        x_pos = base + jax.lax.broadcasted_iota(jnp.int32, x.shape, 1)
        x = jnp.where(x_pos < seq_len, x, jnp.zeros((), dtype=x.dtype))

    # Lane-dense scores over the sequence tile: (TB, 1, TS) f32.  Bias is
    # omitted on purpose: a constant score shift cancels in the softmax.
    w = jnp.broadcast_to(w_ref[...], (tb, 1, d))     # tiny, already x.dtype
    scores = jnp.einsum("bqd,bkd->bqk", w, x,
                        preferred_element_type=jnp.float32)

    if needs_seq_mask:
        # Exclude the padded positions from the softmax statistics.
        k_pos = base + jax.lax.broadcasted_iota(jnp.int32, scores.shape, 2)
        scores = jnp.where(k_pos < seq_len, scores, -jnp.inf)

    # Online (flash-style) softmax update over the sequence axis.
    m_prev = m_sc[...]
    m_new = jnp.maximum(m_prev, jnp.max(scores, axis=-1, keepdims=True))
    alpha = jnp.exp(m_prev - m_new)                  # (TB, 1, 1)
    p = jnp.exp(scores - m_new)                      # (TB, 1, TS)

    l_sc[...] = alpha * l_sc[...] + jnp.sum(p, axis=-1, keepdims=True)
    acc_sc[...] = alpha * acc_sc[...] + jnp.einsum(
        "bqk,bkd->bqd", p.astype(x.dtype), x,
        preferred_element_type=jnp.float32)
    m_sc[...] = m_new

    @pl.when(s_idx == pl.num_programs(1) - 1)
    def _finalize():
        # Exact reciprocal on a (TB,1,1) tensor is negligible; approx=True
        # (~2^-12 rel err) could exceed the test's 1e-4 tolerance.
        o_ref[...] = (acc_sc[...] * pl.reciprocal(l_sc[...], approx=False)
                      ).astype(o_ref.dtype)


def _tpu_limits():
    """Best-effort per-TensorCore VMEM capacity and TC-per-chip count."""
    vmem_bytes = 64 * 1024 * 1024   # conservative default (v7x per-TC)
    num_cores = 1
    try:
        info = pltpu.get_tpu_info()
        vmem_bytes = int(getattr(info, "vmem_capacity_bytes", vmem_bytes))
        for attr in ("num_cores", "num_tensorcores", "tensorcore_count",
                     "cores_per_chip"):
            val = getattr(info, attr, None)
            if val:
                num_cores = int(val)
                break
    except Exception:   # hardware query is advisory; fall back to defaults
        pass
    return vmem_bytes, num_cores


def _choose_tiles(B, S, D, itemsize, vmem_bytes, num_cores):
    """Pick (block_b, block_s) against the per-core VMEM budget."""
    # ~1/10 of per-core VMEM per x buffer: the pipeline double-buffers the x
    # block and we also need room for f32 scratch/temporaries and the output.
    budget_x = max(512 * 1024, vmem_bytes // 10)
    row_bytes = S * D * itemsize

    if row_bytes <= budget_x:
        # Whole sequence rows fit comfortably: tile the batch axis only.
        ts = S
        tb = max(1, min(B, budget_x // max(1, row_bytes)))
    else:
        # Flash path: tile the sequence axis (online softmax in the kernel).
        tb = min(B, 8)
        raw_ts = budget_x // max(1, tb * D * itemsize)
        if raw_ts >= 128:
            ts = (raw_ts // 128) * 128      # lane-dense score tiles
        else:
            ts = max(8, (raw_ts // 8) * 8)  # sublane-aligned minimum
        ts = min(ts, S)

    # Core-aware step cap: only multi-TC chips (v7x) need >= 2 "parallel"
    # batch steps per core; single-TC v5e/v6e keep the largest possible tile.
    if num_cores > 1 and B >= num_cores:
        min_steps = (2 * num_cores) if ts == S else num_cores
        tb = min(tb, max(1, pl.cdiv(B, min_steps)))

    return int(max(1, tb)), int(max(1, ts))


def attention_pooling(token_embeddings, query_w, query_b=None, *,
                      block_b=None, block_s=None):
    """token_embeddings: (B, S, D); query_w: (1, D); query_b: (1,) -> (B, D).

    query_b is accepted for API parity with nn.Linear but is unused in the
    kernel: adding a constant to every score is invariant under the softmax
    over the sequence axis.
    """
    del query_b  # cancels exactly in the softmax over the sequence axis
    B, S, D = token_embeddings.shape
    assert query_w.shape == (1, D), query_w.shape

    itemsize = jnp.dtype(token_embeddings.dtype).itemsize
    vmem_bytes, num_cores = _tpu_limits()
    tb, ts = _choose_tiles(B, S, D, itemsize, vmem_bytes, num_cores)
    if block_b is not None:
        tb = int(max(1, min(block_b, B)))
    if block_s is not None:
        ts = int(max(1, min(block_s, S)))
        if ts != S:
            ts = max(8, (ts // 8) * 8)      # BlockSpec sublane alignment

    n_b = pl.cdiv(B, tb)
    n_s = pl.cdiv(S, ts)
    needs_seq_mask = (S % ts) != 0

    # Hoisted out of the kernel: weight as a (1, 1, D) block in x's dtype so
    # the big x slab is never promoted and the cast is not redone per step.
    w = query_w.reshape(1, 1, D).astype(token_embeddings.dtype)

    # VMEM accounting: double-buffered x + out blocks, f32 scratch, in-kernel
    # f32 temporaries and the broadcast weight copy (+ compiler slack).
    x_block = tb * ts * D * itemsize
    out_block = tb * D * itemsize
    resident = (2 * x_block + 2 * out_block
                + tb * D * 4            # f32 accumulator scratch
                + 3 * tb * ts * 4       # scores / exp / mask temporaries
                + tb * D * itemsize     # broadcast weight inside the kernel
                + (2 << 20))            # slack for compiler scratch
    vmem_limit = max(32 << 20, 2 * resident)
    vmem_limit = int(min(vmem_limit, max(vmem_bytes - (4 << 20), 32 << 20)))

    kernel = functools.partial(_attn_pool_kernel, seq_len=S,
                               needs_seq_mask=needs_seq_mask)

    # Advisory: the kernel is firmly HBM-bandwidth bound.
    cost = pl.CostEstimate(
        flops=4 * B * S * D,
        transcendentals=B * S,
        bytes_accessed=(B * S * D + B * D + D) * itemsize,
    )

    out = pl.pallas_call(
        kernel,
        out_shape=jax.ShapeDtypeStruct((B, 1, D), token_embeddings.dtype),
        grid_spec=pltpu.PrefetchScalarGridSpec(
            num_scalar_prefetch=0,
            grid=(n_b, n_s),
            in_specs=[
                pl.BlockSpec((tb, ts, D), lambda b, s: (b, s, 0)),
                pl.BlockSpec((1, 1, D), lambda b, s: (0, 0, 0)),
            ],
            out_specs=pl.BlockSpec((tb, 1, D), lambda b, s: (b, 0, 0)),
            scratch_shapes=[
                pltpu.VMEM((tb, 1, 1), jnp.float32),   # running max
                pltpu.VMEM((tb, 1, 1), jnp.float32),   # running denominator
                pltpu.VMEM((tb, 1, D), jnp.float32),   # running weighted sum
            ],
        ),
        compiler_params=pltpu.CompilerParams(
            dimension_semantics=("parallel", "arbitrary"),
            vmem_limit_bytes=vmem_limit,
        ),
        cost_estimate=cost,
    )(token_embeddings, w)

    # Kernel writes a lane-dense (B, 1, D) slab; squeeze in the wrapper
    # (layout plumbing, free for XLA).
    return out.reshape(B, D)


def _reference(token_embeddings, query_w, query_b):
    # Matches the PyTorch module: Linear(D, 1) with weight (1, D), bias (1,).
    scores = jnp.einsum("bsd,od->bso", token_embeddings, query_w) + query_b
    attn = jax.nn.softmax(scores, axis=1)
    return jnp.sum(attn * token_embeddings, axis=1)


if __name__ == "__main__":
    # Small but lane/sublane-aligned shapes (S, D multiples of 128).
    B, S, D = 4, 128, 128  # batch, seq, embed_dim

    key = jax.random.PRNGKey(0)
    kx, kw, kb = jax.random.split(key, 3)

    x = jax.random.normal(kx, (B, S, D), dtype=jnp.float32)
    # nn.Linear(embed_dim, 1): weight (1, D), bias (1,)
    query_w = jax.random.normal(kw, (1, D), dtype=jnp.float32) * 0.1
    query_b = jax.random.normal(kb, (1,), dtype=jnp.float32) * 0.1

    ref = _reference(x, query_w, query_b)

    # 1) Default auto-tiled path (whole-row tiles at this size).
    out = jax.block_until_ready(attention_pooling(x, query_w, query_b))
    assert out.shape == (B, D)
    err = jnp.max(jnp.abs(out - ref))
    assert jnp.allclose(out, ref, atol=1e-4, rtol=1e-4), (
        f"auto-tile mismatch: max abs err {err}")

    # 2) Force the flash (sequence-tiled online-softmax) path, including a
    #    partial last sequence tile (S % block_s != 0) and a partial batch
    #    tile (B % block_b != 0), to exercise the masking code.
    out2 = jax.block_until_ready(
        attention_pooling(x, query_w, query_b, block_b=3, block_s=48))
    err2 = jnp.max(jnp.abs(out2 - ref))
    assert jnp.allclose(out2, ref, atol=1e-4, rtol=1e-4), (
        f"flash-tile mismatch: max abs err {err2}")

    print("KERNEL_OK")
</pallas_src>

<mosaic_0001>
module attributes {stable_mosaic.version = 11 : i64} {
  func.func @_attn_pool_kernel(%arg0: i32, %arg1: i32, %arg2: memref<4x128x128xf32, #tpu.memory_space<vmem>>, %arg3: memref<1x1x128xf32, #tpu.memory_space<vmem>>, %arg4: memref<4x1x128xf32, #tpu.memory_space<vmem>>, %arg5: memref<4x1x1xf32, #tpu.memory_space<vmem>>, %arg6: memref<4x1x1xf32, #tpu.memory_space<vmem>>, %arg7: memref<4x1x128xf32, #tpu.memory_space<vmem>>) attributes {dimension_semantics = [#tpu.dimension_semantics<parallel>, #tpu.dimension_semantics<arbitrary>], iteration_bounds = array<i64: 1, 1>, scalar_prefetch = 0 : i64, scratch_operands = 3 : i64, tpu.core_type = #tpu.core_type<tc>, window_params = [{transform_indices = @transform_0, window_bounds = array<i64: 4, 128, 128>}, {pipeline_mode = #tpu.pipeline_mode<synchronous>, transform_indices = @transform_1, window_bounds = array<i64: 1, 1, 128>}, {transform_indices = @transform_2, window_bounds = array<i64: 4, 1, 128>}]} {
    %c0_i32 = arith.constant 0 : i32
    %0 = arith.cmpi eq, %arg1, %c0_i32 : i32
    %1 = arith.extui %0 : i1 to i32
    %c0_i32_0 = arith.constant 0 : i32
    %2 = arith.cmpi ne, %1, %c0_i32_0 : i32
    scf.if %2 {
      %cst_29 = arith.constant 0xFF800000 : f32
      %33 = vector.broadcast %cst_29 : f32 to vector<4x1x1xf32>
      %c0_30 = arith.constant 0 : index
      %c0_31 = arith.constant 0 : index
      %c0_32 = arith.constant 0 : index
      %34 = vector.load %arg5[%c0_30, %c0_31, %c0_32] : memref<4x1x1xf32, #tpu.memory_space<vmem>>, vector<4x1x1xf32>
      tpu.vector_store %arg5[%c0_30, %c0_31, %c0_32], %33 {strides = array<i32>} : memref<4x1x1xf32, #tpu.memory_space<vmem>>, vector<4x1x1xf32>,
      %cst_33 = arith.constant 0.000000e+00 : f32
      %35 = vector.broadcast %cst_33 : f32 to vector<4x1x1xf32>
      %c0_34 = arith.constant 0 : index
      %c0_35 = arith.constant 0 : index
      %c0_36 = arith.constant 0 : index
      %36 = vector.load %arg6[%c0_34, %c0_35, %c0_36] : memref<4x1x1xf32, #tpu.memory_space<vmem>>, vector<4x1x1xf32>
      tpu.vector_store %arg6[%c0_34, %c0_35, %c0_36], %35 {strides = array<i32>} : memref<4x1x1xf32, #tpu.memory_space<vmem>>, vector<4x1x1xf32>,
      %cst_37 = arith.constant 0.000000e+00 : f32
      %37 = vector.broadcast %cst_37 : f32 to vector<4x1x128xf32>
      %c0_38 = arith.constant 0 : index
      %c0_39 = arith.constant 0 : index
      %c0_40 = arith.constant 0 : index
      %38 = vector.load %arg7[%c0_38, %c0_39, %c0_40] : memref<4x1x128xf32, #tpu.memory_space<vmem>>, vector<4x1x128xf32>
      tpu.vector_store %arg7[%c0_38, %c0_39, %c0_40], %37 {strides = array<i32>} : memref<4x1x128xf32, #tpu.memory_space<vmem>>, vector<4x1x128xf32>,
    } else {
    }
    %c0 = arith.constant 0 : index
    %c0_1 = arith.constant 0 : index
    %c0_2 = arith.constant 0 : index
    %3 = vector.load %arg2[%c0, %c0_1, %c0_2] : memref<4x128x128xf32, #tpu.memory_space<vmem>>, vector<4x128x128xf32>
    %c0_3 = arith.constant 0 : index
    %c0_4 = arith.constant 0 : index
    %c0_5 = arith.constant 0 : index
    %4 = vector.load %arg3[%c0_3, %c0_4, %c0_5] : memref<1x1x128xf32, #tpu.memory_space<vmem>>, vector<1x1x128xf32>
    %5 = vector.shape_cast %4 : vector<1x1x128xf32> to vector<1x1x128xf32>
    %6 = vector.broadcast %5 : vector<1x1x128xf32> to vector<4x1x128xf32>
    "tpu.trace_start"() <{level = 10 : i32, message = "bqd,bkd->bqk"}> : () -> ()
    %cst = arith.constant dense<0.000000e+00> : vector<4x1x128xf32>
    %7 = tpu.matmul %6, %3, %cst {dimension_numbers = #tpu.dot_dimension_numbers<[2], [2], [1], [1], [0, 0, 0, 1, 1, 1], [0], [0]>} : vector<4x1x128xf32>, vector<4x128x128xf32>, vector<4x1x128xf32> -> vector<4x1x128xf32>
    "tpu.trace_stop"() : () -> ()
    %c0_6 = arith.constant 0 : index
    %c0_7 = arith.constant 0 : index
    %c0_8 = arith.constant 0 : index
    %8 = vector.load %arg5[%c0_6, %c0_7, %c0_8] : memref<4x1x1xf32, #tpu.memory_space<vmem>>, vector<4x1x1xf32>
    %cst_9 = arith.constant dense<0xFF800000> : vector<4x1xf32>
    %9 = vector.multi_reduction <maximumf>, %7, %cst_9 [2] : vector<4x1x128xf32> to vector<4x1xf32>
    %10 = vector.shape_cast %9 : vector<4x1xf32> to vector<4x1x1xf32>
    %11 = arith.maximumf %8, %10 : vector<4x1x1xf32>
    %12 = arith.subf %8, %11 : vector<4x1x1xf32>
    %13 = math.exp %12 : vector<4x1x1xf32>
    %14 = vector.broadcast %11 : vector<4x1x1xf32> to vector<4x1x128xf32>
    %15 = arith.subf %7, %14 : vector<4x1x128xf32>
    %16 = math.exp %15 : vector<4x1x128xf32>
    %c0_10 = arith.constant 0 : index
    %c0_11 = arith.constant 0 : index
    %c0_12 = arith.constant 0 : index
    %17 = vector.load %arg6[%c0_10, %c0_11, %c0_12] : memref<4x1x1xf32, #tpu.memory_space<vmem>>, vector<4x1x1xf32>
    %18 = arith.mulf %13, %17 : vector<4x1x1xf32>
    %cst_13 = arith.constant dense<0.000000e+00> : vector<4x1xf32>
    %19 = vector.multi_reduction <add>, %16, %cst_13 [2] : vector<4x1x128xf32> to vector<4x1xf32>
    %20 = vector.shape_cast %19 : vector<4x1xf32> to vector<4x1x1xf32>
    %21 = arith.addf %18, %20 : vector<4x1x1xf32>
    %c0_14 = arith.constant 0 : index
    %c0_15 = arith.constant 0 : index
    %c0_16 = arith.constant 0 : index
    %22 = vector.load %arg6[%c0_14, %c0_15, %c0_16] : memref<4x1x1xf32, #tpu.memory_space<vmem>>, vector<4x1x1xf32>
    tpu.vector_store %arg6[%c0_14, %c0_15, %c0_16], %21 {strides = array<i32>} : memref<4x1x1xf32, #tpu.memory_space<vmem>>, vector<4x1x1xf32>,
    %c0_17 = arith.constant 0 : index
    %c0_18 = arith.constant 0 : index
    %c0_19 = arith.constant 0 : index
    %23 = vector.load %arg7[%c0_17, %c0_18, %c0_19] : memref<4x1x128xf32, #tpu.memory_space<vmem>>, vector<4x1x128xf32>
    %24 = vector.broadcast %13 : vector<4x1x1xf32> to vector<4x1x128xf32>
    %25 = arith.mulf %24, %23 : vector<4x1x128xf32>
    "tpu.trace_start"() <{level = 10 : i32, message = "bqk,bkd->bqd"}> : () -> ()
    %cst_20 = arith.constant dense<0.000000e+00> : vector<4x1x128xf32>
    %26 = tpu.matmul %16, %3, %cst_20 {dimension_numbers = #tpu.dot_dimension_numbers<[2], [1], [1], [2], [0, 0, 0, 1, 1, 2], [0], [0]>} : vector<4x1x128xf32>, vector<4x128x128xf32>, vector<4x1x128xf32> -> vector<4x1x128xf32>
    "tpu.trace_stop"() : () -> ()
    %27 = arith.addf %25, %26 : vector<4x1x128xf32>
    %c0_21 = arith.constant 0 : index
    %c0_22 = arith.constant 0 : index
    %c0_23 = arith.constant 0 : index
    %28 = vector.load %arg7[%c0_21, %c0_22, %c0_23] : memref<4x1x128xf32, #tpu.memory_space<vmem>>, vector<4x1x128xf32>
    tpu.vector_store %arg7[%c0_21, %c0_22, %c0_23], %27 {strides = array<i32>} : memref<4x1x128xf32, #tpu.memory_space<vmem>>, vector<4x1x128xf32>,
    %c0_24 = arith.constant 0 : index
    %c0_25 = arith.constant 0 : index
    %c0_26 = arith.constant 0 : index
    %29 = vector.load %arg5[%c0_24, %c0_25, %c0_26] : memref<4x1x1xf32, #tpu.memory_space<vmem>>, vector<4x1x1xf32>
    tpu.vector_store %arg5[%c0_24, %c0_25, %c0_26], %11 {strides = array<i32>} : memref<4x1x1xf32, #tpu.memory_space<vmem>>, vector<4x1x1xf32>,
    %c0_i32_27 = arith.constant 0 : i32
    %30 = arith.cmpi eq, %arg1, %c0_i32_27 : i32
    %31 = arith.extui %30 : i1 to i32
    %c0_i32_28 = arith.constant 0 : i32
    %32 = arith.cmpi ne, %31, %c0_i32_28 : i32
    scf.if %32 {
      %c0_29 = arith.constant 0 : index
      %c0_30 = arith.constant 0 : index
      %c0_31 = arith.constant 0 : index
      %33 = vector.load %arg7[%c0_29, %c0_30, %c0_31] : memref<4x1x128xf32, #tpu.memory_space<vmem>>, vector<4x1x128xf32>
      %c0_32 = arith.constant 0 : index
      %c0_33 = arith.constant 0 : index
      %c0_34 = arith.constant 0 : index
      %34 = vector.load %arg6[%c0_32, %c0_33, %c0_34] : memref<4x1x1xf32, #tpu.memory_space<vmem>>, vector<4x1x1xf32>
      %35 = tpu.reciprocal %34 : vector<4x1x1xf32> -> vector<4x1x1xf32>
      %36 = vector.broadcast %35 : vector<4x1x1xf32> to vector<4x1x128xf32>
      %37 = arith.mulf %33, %36 : vector<4x1x128xf32>
      %c0_35 = arith.constant 0 : index
      %c0_36 = arith.constant 0 : index
      %c0_37 = arith.constant 0 : index
      %38 = vector.load %arg4[%c0_35, %c0_36, %c0_37] : memref<4x1x128xf32, #tpu.memory_space<vmem>>, vector<4x1x128xf32>
      tpu.vector_store %arg4[%c0_35, %c0_36, %c0_37], %37 {strides = array<i32>} : memref<4x1x128xf32, #tpu.memory_space<vmem>>, vector<4x1x128xf32>,
    } else {
    }
    return
  }
  func.func @transform_0(%arg0: i32, %arg1: i32) -> (i32, i32, i32) {
    %c0_i32 = arith.constant 0 : i32
    %c0_i32_0 = arith.constant 0 : i32
    return %arg0, %arg1, %c0_i32 : i32, i32, i32
  }
  func.func @transform_1(%arg0: i32, %arg1: i32) -> (i32, i32, i32) {
    %c0_i32 = arith.constant 0 : i32
    %c0_i32_0 = arith.constant 0 : i32
    %c0_i32_1 = arith.constant 0 : i32
    %c0_i32_2 = arith.constant 0 : i32
    return %c0_i32, %c0_i32_0, %c0_i32_1 : i32, i32, i32
  }
  func.func @transform_2(%arg0: i32, %arg1: i32) -> (i32, i32, i32) {
    %c0_i32 = arith.constant 0 : i32
    %c0_i32_0 = arith.constant 0 : i32
    %c0_i32_1 = arith.constant 0 : i32
    return %arg0, %c0_i32, %c0_i32_0 : i32, i32, i32
  }
}

</mosaic_0001>

<bundles_post_ra>
// kernel: tpu_custom_call.1
= control target key start
LH: loop header
LB: loop body
LE: loop exit
PB: predicated region body
PF: predicated region fallthrough
CT: control target
= control target key end

     0   :  { %7 = vsyncpa [#allocation6], 0  ;;  %s989_s0 = inlined_call_operand.hbm [shape: f32[4,128,128], index: 0, kind: input, shape index: {}]   ;;  %s990_s1 = inlined_call_operand.hbm [shape: f32[1,1,128], index: 1, kind: input, shape index: {}]   ;;  %s991_s2 = inlined_call_operand.hbm [shape: f32[4,1,128], index: 2, kind: output, shape index: {}]  }
   0x1   :  { %8 = vsyncpa [#allocation9], 0 }
   0x2   :  { %9 = vsyncpa [#allocation7], 0  ;;  %s14_s11 = sshll.u32 %s989_s0, 4  ;;  %s660_s12 = smov [#allocation5]   ;;  %s15_s11 = int_to_ptr.hbm [resolvable:$true] %s14_s11 }
   0x3   :  { %s16_s13 = sshll.u32 %s660_s12, 4  ;;  %s28_s16 = sshll.u32 %s990_s1, 4  ;;  %s17_s13 = int_to_ptr.vmem [resolvable:$true] %s16_s13  ;;  %s29_s16 = int_to_ptr.hbm [resolvable:$true] %s28_s16 }
   0x4   :  { %s661_s17 = smov 128   ;;  %s662_s18 = smov 8  }
   0x5   :  { %22 = dma.hbm_to_vmem [thread:$0]  %s15_s11, 8192, %s17_s13, [#allocation6], %s661_s17, %s661_s17, %s662_s18  }
   0x6   :  { %s663_s19 = smov [#allocation8]  }
   0x7   :  { %s30_s20 = sshll.u32 %s663_s19, 4  ;;  %s31_s20 = int_to_ptr.vmem [resolvable:$true] %s30_s20 }
   0x8   :  { %33 = dma.hbm_to_vmem [thread:$0]  %s29_s16, 16, %s31_s20, [#allocation9]  }
   0x9   :  { %654 = dma.done.wait [#allocation6], 8192  }
   0xa   :  { %655 = vsyncadd [#allocation6], 4294959104 }
   0xb   :  { %656 = dma.done.wait [#allocation9], 16  }
   0xc   :  { %657 = vsyncadd [#allocation9], 4294967280  ;;  %v691_v0 = vld [vmem:[#allocation5 + $0x78] sm:$0xff]  ;;  %v699_v3 = vld [vmem:[#allocation5 + $0x70] sm:$0xff]  ;;  %vm46_vm0 = vcmask 0   ;;  %vm208_vm1 = vcmask 1040384  }
   0xd   :  { %v693_v1 = vld [vmem:[#allocation5 + $0x178] sm:$0xff]  ;;  %124 = vmatpush.xpose.msra.mxu0 %v691_v0  ;;  %v701_v4 = vld [vmem:[#allocation5 + $0x170] sm:$0xff]  ;;  %v713_v8 = vld [vmem:[#allocation5 + $0x68] sm:$0xff]  ;;  %s667_s0 = smov [#allocation10]   ;;  %s531_s23 = sshll.u32 %s991_s2, 4  ;;  %s532_s23 = int_to_ptr.hbm [resolvable:$true] %s531_s23 }
   0xe   :  { %164 = vmatpush.xpose.msra.mxu2 %v693_v1  ;;  %v697_v2 = vld [vmem:[#allocation5 + $0xf8] sm:$0xff]  ;;  %v707_v6 = vld [vmem:[#allocation5 + $0xf0] sm:$0xff]  ;;  %v715_v9 = vld [vmem:[#allocation5 + $0x168] sm:$0xff]  ;;  %s529_s1 = sshll.u32 %s667_s0, 4  ;;  %s668_s24 = smov 16   ;;  %s530_s1 = int_to_ptr.vmem [resolvable:$true] %s529_s1 }
   0xf   :  { %144 = vmatpush.xpose.msra.mxu1 %v697_v2  ;;  %v704_v5 = vld [vmem:[#allocation5 + $0x1f8] sm:$0xff]  ;;  %v709_v7 = vld [vmem:[#allocation5 + $0x1f0] sm:$0xff]  ;;  %v719_v10 = vld [vmem:[#allocation5 + $0xe8] sm:$0xff]  ;;  %s669_s25 = smov 1  }
  0x10   :  { %184 = vmatpush.xpose.msra.mxu3 %v704_v5  ;;  %v721_v11 = vld [vmem:[#allocation5 + $0x1e8] sm:$0xff]  ;;  %v725_v12 = vld [vmem:[#allocation5 + $0x60] sm:$0xff]  ;;  %v737_v16 = vld [vmem:[#allocation5 + $0x58] sm:$0xff] }
  0x11   :  { %125 = vmatpush.xpose.msra.mxu0 %v699_v3  ;;  %v727_v13 = vld [vmem:[#allocation5 + $0x160] sm:$0xff]  ;;  %v739_v17 = vld [vmem:[#allocation5 + $0x158] sm:$0xff]  ;;  %v749_v20 = vld [vmem:[#allocation5 + $0x50] sm:$0xff] }
  0x12   :  { %165 = vmatpush.xpose.msra.mxu2 %v701_v4  ;;  %v731_v14 = vld [vmem:[#allocation5 + $0xe0] sm:$0xff]  ;;  %v743_v18 = vld [vmem:[#allocation5 + $0xd8] sm:$0xff]  ;;  %v751_v21 = vld [vmem:[#allocation5 + $0x150] sm:$0xff] }
  0x13   :  { %145 = vmatpush.xpose.msra.mxu1 %v707_v6  ;;  %v733_v15 = vld [vmem:[#allocation5 + $0x1e0] sm:$0xff]  ;;  %v745_v19 = vld [vmem:[#allocation5 + $0x1d8] sm:$0xff]  ;;  %v755_v22 = vld [vmem:[#allocation5 + $0xd0] sm:$0xff] }
  0x14   :  { %185 = vmatpush.xpose.msra.mxu3 %v709_v7  ;;  %v757_v23 = vld [vmem:[#allocation5 + $0x1d0] sm:$0xff]  ;;  %v761_v24 = vld [vmem:[#allocation5 + $0x48] sm:$0xff]  ;;  %v773_v28 = vld [vmem:[#allocation5 + $0x40] sm:$0xff] }
  0x15   :  { %126 = vmatpush.xpose.msra.mxu0 %v713_v8  ;;  %v763_v25 = vld [vmem:[#allocation5 + $0x148] sm:$0xff]  ;;  %v775_v29 = vld [vmem:[#allocation5 + $0x140] sm:$0xff]  ;;  %v785_v32 = vld [vmem:[#allocation5 + $0x38] sm:$0xff] }
  0x16   :  { %166 = vmatpush.xpose.msra.mxu2 %v715_v9  ;;  %v767_v26 = vld [vmem:[#allocation5 + $0xc8] sm:$0xff]  ;;  %v779_v30 = vld [vmem:[#allocation5 + $0xc0] sm:$0xff]  ;;  %v787_v33 = vld [vmem:[#allocation5 + $0x138] sm:$0xff] }
  0x17   :  { %146 = vmatpush.xpose.msra.mxu1 %v719_v10  ;;  %v769_v27 = vld [vmem:[#allocation5 + $0x1c8] sm:$0xff]  ;;  %v781_v31 = vld [vmem:[#allocation5 + $0x1c0] sm:$0xff]  ;;  %v791_v34 = vld [vmem:[#allocation5 + $0xb8] sm:$0xff] }
  0x18   :  { %186 = vmatpush.xpose.msra.mxu3 %v721_v11  ;;  %v793_v35 = vld [vmem:[#allocation5 + $0x1b8] sm:$0xff]  ;;  %v797_v36 = vld [vmem:[#allocation5 + $0x30] sm:$0xff]  ;;  %v809_v40 = vld [vmem:[#allocation5 + $0x28] sm:$0xff] }
  0x19   :  { %127 = vmatpush.xpose.msra.mxu0 %v725_v12  ;;  %v799_v37 = vld [vmem:[#allocation5 + $0x130] sm:$0xff]  ;;  %v811_v41 = vld [vmem:[#allocation5 + $0x128] sm:$0xff]  ;;  %v821_v44 = vld [vmem:[#allocation5 + $0x20] sm:$0xff] }
  0x1a   :  { %167 = vmatpush.xpose.msra.mxu2 %v727_v13  ;;  %v803_v38 = vld [vmem:[#allocation5 + $0xb0] sm:$0xff]  ;;  %v815_v42 = vld [vmem:[#allocation5 + $0xa8] sm:$0xff]  ;;  %v823_v45 = vld [vmem:[#allocation5 + $0x120] sm:$0xff] }
  0x1b   :  { %147 = vmatpush.xpose.msra.mxu1 %v731_v14  ;;  %v805_v39 = vld [vmem:[#allocation5 + $0x1b0] sm:$0xff]  ;;  %v817_v43 = vld [vmem:[#allocation5 + $0x1a8] sm:$0xff]  ;;  %v827_v46 = vld [vmem:[#allocation5 + $0xa0] sm:$0xff] }
  0x1c   :  { %187 = vmatpush.xpose.msra.mxu3 %v733_v15  ;;  %v829_v47 = vld [vmem:[#allocation5 + $0x1a0] sm:$0xff]  ;;  %v833_v48 = vld [vmem:[#allocation5 + $0x18] sm:$0xff]  ;;  %v845_v52 = vld [vmem:[#allocation5 + $0x10] sm:$0xff] }
  0x1d   :  { %128 = vmatpush.xpose.msra.mxu0 %v737_v16  ;;  %v835_v49 = vld [vmem:[#allocation5 + $0x118] sm:$0xff]  ;;  %v847_v53 = vld [vmem:[#allocation5 + $0x110] sm:$0xff]  ;;  %v857_v56 = vld [vmem:[#allocation5 + $0x8] sm:$0xff] }
  0x1e   :  { %168 = vmatpush.xpose.msra.mxu2 %v739_v17  ;;  %v839_v50 = vld [vmem:[#allocation5 + $0x98] sm:$0xff]  ;;  %v851_v54 = vld [vmem:[#allocation5 + $0x90] sm:$0xff]  ;;  %v859_v57 = vld [vmem:[#allocation5 + $0x108] sm:$0xff] }
  0x1f   :  { %148 = vmatpush.xpose.msra.mxu1 %v743_v18  ;;  %v841_v51 = vld [vmem:[#allocation5 + $0x198] sm:$0xff]  ;;  %993 = vst [vmem:[#allocation14_spill] sm:$0xff] %v851_v54  ;;  %v853_v55 = vld [vmem:[#allocation5 + $0x190] sm:$0xff]  ;;  %v863_v58 = vld [vmem:[#allocation5 + $0x88] sm:$0xff] }
  0x20   :  { %188 = vmatpush.xpose.msra.mxu3 %v745_v19  ;;  %v865_v59 = vld [vmem:[#allocation5 + $0x188] sm:$0xff]  ;;  %v869_v60 = vld [vmem:[#allocation5] sm:$0xff] }
  0x21   :  { %129 = vmatpush.xpose.msra.mxu0 %v749_v20  ;;  %v871_v61 = vld [vmem:[#allocation5 + $0x100] sm:$0xff] }
  0x22   :  { %169 = vmatpush.xpose.msra.mxu2 %v751_v21  ;;  %v875_v62 = vld [vmem:[#allocation5 + $0x80] sm:$0xff] }
  0x23   :  { %149 = vmatpush.xpose.msra.mxu1 %v755_v22  ;;  %v877_v63 = vld [vmem:[#allocation5 + $0x180] sm:$0xff] }
  0x24   :  { %189 = vmatpush.xpose.msra.mxu3 %v757_v23 }
  0x25   :  { %130 = vmatpush.xpose.msra.mxu0 %v761_v24 }
  0x26   :  { %170 = vmatpush.xpose.msra.mxu2 %v763_v25 }
  0x27   :  { %150 = vmatpush.xpose.msra.mxu1 %v767_v26 }
  0x28   :  { %190 = vmatpush.xpose.msra.mxu3 %v769_v27 }
  0x29   :  { %131 = vmatpush.xpose.msra.mxu0 %v773_v28 }
  0x2a   :  { %171 = vmatpush.xpose.msra.mxu2 %v775_v29 }
  0x2b   :  { %151 = vmatpush.xpose.msra.mxu1 %v779_v30 }
  0x2c   :  { %191 = vmatpush.xpose.msra.mxu3 %v781_v31 }
  0x2d   :  { %132 = vmatpush.xpose.msra.mxu0 %v785_v32 }
  0x2e   :  { %172 = vmatpush.xpose.msra.mxu2 %v787_v33 }
  0x2f   :  { %152 = vmatpush.xpose.msra.mxu1 %v791_v34 }
  0x30   :  { %192 = vmatpush.xpose.msra.mxu3 %v793_v35 }
  0x31   :  { %133 = vmatpush.xpose.msra.mxu0 %v797_v36 }
  0x32   :  { %173 = vmatpush.xpose.msra.mxu2 %v799_v37 }
  0x33   :  { %153 = vmatpush.xpose.msra.mxu1 %v803_v38 }
  0x34   :  { %193 = vmatpush.xpose.msra.mxu3 %v805_v39 }
  0x35   :  { %134 = vmatpush.xpose.msra.mxu0 %v809_v40 }
  0x36   :  { %174 = vmatpush.xpose.msra.mxu2 %v811_v41 }
  0x37   :  { %154 = vmatpush.xpose.msra.mxu1 %v815_v42 }
  0x38   :  { %194 = vmatpush.xpose.msra.mxu3 %v817_v43 }
  0x39   :  { %135 = vmatpush.xpose.msra.mxu0 %v821_v44 }
  0x3a   :  { %175 = vmatpush.xpose.msra.mxu2 %v823_v45 }
  0x3b   :  { %155 = vmatpush.xpose.msra.mxu1 %v827_v46 }
  0x3c   :  { %195 = vmatpush.xpose.msra.mxu3 %v829_v47 }
  0x3d   :  { %136 = vmatpush.xpose.msra.mxu0 %v833_v48 }
  0x3e   :  { %176 = vmatpush.xpose.msra.mxu2 %v835_v49 }
  0x3f   :  { %156 = vmatpush.xpose.msra.mxu1 %v839_v50 }
  0x40   :  { %196 = vmatpush.xpose.msra.mxu3 %v841_v51 }
  0x41   :  { %137 = vmatpush.xpose.msra.mxu0 %v845_v52 }
  0x42   :  { %177 = vmatpush.xpose.msra.mxu2 %v847_v53 }
  0x43   :  { %157 = vmatpush.xpose.msra.mxu1 %v851_v54  ;;  %v123_v54 = vld [vmem:[#allocation8] sm:$0x1] }
  0x44   :  { %197 = vmatpush.xpose.msra.mxu3 %v853_v55 }
  0x45   :  { %138 = vmatpush.xpose.msra.mxu0 %v857_v56 }
  0x46   :  { %178 = vmatpush.xpose.msra.mxu2 %v859_v57 }
  0x47   :  { %158 = vmatpush.xpose.msra.mxu1 %v863_v58 }
  0x48   :  { %198 = vmatpush.xpose.msra.mxu3 %v865_v59 }
  0x49   :  { %139 = vmatpush.xpose.msra.mxu0 %v869_v60 }
  0x4a   :  { %179 = vmatpush.xpose.msra.mxu2 %v871_v61 }
  0x4b   :  { %159 = vmatpush.xpose.msra.mxu1 %v875_v62 }
  0x4c   :  { %199 = vmatpush.xpose.msra.mxu3 %v877_v63  ;;  %140 = vmatmul.f32.vlgmr.msra.gmra.mxu0 %v123_v54 }
  0x4d   :  { %334 = vmatpush.msrb.mxu0 %v691_v0  ;;  %180 = vmatmul.f32.vlgmr.msra.gmra.mxu2 %v123_v54  ;;  %v994_v0 = vld [vmem:[#allocation14_spill] sm:$0xff] }
  0x4e   :  { %374 = vmatpush.msrb.mxu2 %v693_v1  ;;  %160 = vmatmul.f32.vlgmr.msra.gmra.mxu1 %v123_v54  ;;  %v664_v1 = vmov -inf  }
  0x4f   :  { %200 = vmatmul.f32.vlgmr.msra.gmra.mxu3 %v123_v54  ;;  %335 = vmatpush.msrb.mxu0 %v699_v3  ;;  %47 = vst.msk [vmem:[#allocation2] sm:$0x1] %vm46_vm0, %v664_v1 }
  0x50   :  { %375 = vmatpush.msrb.mxu2 %v701_v4  ;;  %394 = vmatpush.msrb.mxu3 %v704_v5  ;;  %48 = vst.msk [vmem:[#allocation2 + $0x1] sm:$0x1] %vm46_vm0, %v664_v1 }
  0x51   :  { %336 = vmatpush.msrb.mxu0 %v713_v8  ;;  %354 = vmatpush.msrb.mxu1 %v697_v2  ;;  %49 = vst.msk [vmem:[#allocation2 + $0x2] sm:$0x1] %vm46_vm0, %v664_v1 }
  0x52   :  { %376 = vmatpush.msrb.mxu2 %v715_v9  ;;  %395 = vmatpush.msrb.mxu3 %v709_v7  ;;  %50 = vst.msk [vmem:[#allocation2 + $0x3] sm:$0x1] %vm46_vm0, %v664_v1 }
  0x53   :  { %337 = vmatpush.msrb.mxu0 %v725_v12  ;;  %355 = vmatpush.msrb.mxu1 %v707_v6 }
  0x54   :  { %377 = vmatpush.msrb.mxu2 %v727_v13  ;;  %396 = vmatpush.msrb.mxu3 %v721_v11  ;;  %v666_v11 = vmov 0.0  }
  0x55   :  { %338 = vmatpush.msrb.mxu0 %v737_v16  ;;  %356 = vmatpush.msrb.mxu1 %v719_v10  ;;  %v665_v10 = vmov 0   ;;  %53 = vst.msk [vmem:[#allocation3 + $0x2] sm:$0x1] %vm46_vm0, %v666_v11 }
  0x56   :  { %378 = vmatpush.msrb.mxu2 %v739_v17  ;;  %397 = vmatpush.msrb.mxu3 %v733_v15  ;;  %51 = vst.msk [vmem:[#allocation3] sm:$0x1] %vm46_vm0, %v666_v11  ;;  %v204_v12 = vld [vmem:[#allocation2] sm:$0x1] }
  0x57   :  { %339 = vmatpush.msrb.mxu0 %v749_v20  ;;  %357 = vmatpush.msrb.mxu1 %v731_v14  ;;  %52 = vst.msk [vmem:[#allocation3 + $0x1] sm:$0x1] %vm46_vm0, %v666_v11 }
  0x58   :  { %379 = vmatpush.msrb.mxu2 %v751_v21  ;;  %398 = vmatpush.msrb.mxu3 %v745_v19  ;;  %54 = vst.msk [vmem:[#allocation3 + $0x3] sm:$0x1] %vm46_vm0, %v666_v11  ;;  %v206_v16 = vld [vmem:[#allocation2 + $0x2] sm:$0x1] }
  0x59   :  { %340 = vmatpush.msrb.mxu0 %v761_v24  ;;  %358 = vmatpush.msrb.mxu1 %v743_v18  ;;  %55 = vst [vmem:[#allocation4] sm:$0x1] %v666_v11  ;;  %v205_v18 = vld [vmem:[#allocation2 + $0x1] sm:$0x1]  ;;  %v207_v24 = vld [vmem:[#allocation2 + $0x3] sm:$0x1] }
  0x5a   :  { %380 = vmatpush.msrb.mxu2 %v763_v25  ;;  %399 = vmatpush.msrb.mxu3 %v757_v23  ;;  %56 = vst [vmem:[#allocation4 + $0x1] sm:$0x1] %v666_v11 }
  0x5b   :  { %341 = vmatpush.msrb.mxu0 %v773_v28  ;;  %359 = vmatpush.msrb.mxu1 %v755_v22  ;;  %57 = vst [vmem:[#allocation4 + $0x2] sm:$0x1] %v666_v11 }
  0x5c   :  { %381 = vmatpush.msrb.mxu2 %v775_v29  ;;  %400 = vmatpush.msrb.mxu3 %v769_v27  ;;  %58 = vst [vmem:[#allocation4 + $0x3] sm:$0x1] %v666_v11 }
  0x5d   :  { %342 = vmatpush.msrb.mxu0 %v785_v32  ;;  %360 = vmatpush.msrb.mxu1 %v767_v26  ;;  %v273_v1 = vld [vmem:[#allocation3] sm:$0x1] }
  0x5e   :  { %382 = vmatpush.msrb.mxu2 %v787_v33  ;;  %401 = vmatpush.msrb.mxu3 %v781_v31 }
  0x5f   :  { %343 = vmatpush.msrb.mxu0 %v797_v36  ;;  %361 = vmatpush.msrb.mxu1 %v779_v30 }
  0x60   :  { %383 = vmatpush.msrb.mxu2 %v799_v37  ;;  %402 = vmatpush.msrb.mxu3 %v793_v35 }
  0x61   :  { %344 = vmatpush.msrb.mxu0 %v809_v40  ;;  %362 = vmatpush.msrb.mxu1 %v791_v34 }
  0x62   :  { %384 = vmatpush.msrb.mxu2 %v811_v41  ;;  %403 = vmatpush.msrb.mxu3 %v805_v39 }
  0x63   :  { %345 = vmatpush.msrb.mxu0 %v821_v44  ;;  %363 = vmatpush.msrb.mxu1 %v803_v38 }
  0x64   :  { %385 = vmatpush.msrb.mxu2 %v823_v45  ;;  %404 = vmatpush.msrb.mxu3 %v817_v43 }
  0x65   :  { %346 = vmatpush.msrb.mxu0 %v833_v48  ;;  %364 = vmatpush.msrb.mxu1 %v815_v42 }
  0x66   :  { %386 = vmatpush.msrb.mxu2 %v835_v49  ;;  %405 = vmatpush.msrb.mxu3 %v829_v47 }
  0x67   :  { %347 = vmatpush.msrb.mxu0 %v845_v52  ;;  %365 = vmatpush.msrb.mxu1 %v827_v46 }
  0x68   :  { %387 = vmatpush.msrb.mxu2 %v847_v53  ;;  %406 = vmatpush.msrb.mxu3 %v841_v51 }
  0x69   :  { %348 = vmatpush.msrb.mxu0 %v857_v56  ;;  %366 = vmatpush.msrb.mxu1 %v839_v50 }
  0x6a   :  { %388 = vmatpush.msrb.mxu2 %v859_v57  ;;  %407 = vmatpush.msrb.mxu3 %v853_v55 }
  0x6b   :  { %349 = vmatpush.msrb.mxu0 %v869_v60  ;;  %367 = vmatpush.msrb.mxu1 %v994_v0  ;;  %v275_v60 = vld [vmem:[#allocation3 + $0x2] sm:$0x1] }
  0x6c   :  { %389 = vmatpush.msrb.mxu2 %v871_v61  ;;  %408 = vmatpush.msrb.mxu3 %v865_v59 }
  0x6d   :  { %368 = vmatpush.msrb.mxu1 %v863_v58  ;;  %556 = vset.pattern.permute.xlu0 %v665_v10 }
  0x6e   :  { %409 = vmatpush.msrb.mxu3 %v877_v63  ;;  %555 = vset.pattern.permute.xlu2 %v665_v10 }
  0x6f   :  { %369 = vmatpush.msrb.mxu1 %v875_v62  ;;  %557 = vset.pattern.permute.xlu1 %v665_v10  ;;  %v276_v10 = vld [vmem:[#allocation3 + $0x3] sm:$0x1] }
  0xc9   :  { %v951_v2 = vpop.f32.mrf.mxu0 }
  0xca   :  { %v209_v3 = vsel %vm208_vm1, %v951_v2, -inf }
  0xcb   :  { %210 = vmax.xlane.f32.xlu1 %v209_v3  ;;  %v955_v4 = vpop.f32.mrf.mxu1 }
  0xcc   :  { %v212_v7 = vsel %vm208_vm1, %v955_v4, -inf }
  0xd0   :  { %v181_v5 = vpop.f32.mrf.mxu2 }
  0xd1   :  { %v215_v6 = vsel %vm208_vm1, %v181_v5, -inf }
  0xd2   :  { %216 = vmax.xlane.f32.xlu0 %v215_v6  ;;  %v201_v8 = vpop.f32.mrf.mxu3 }
  0xd3   :  { %213 = vmax.xlane.f32.xlu1 %v212_v7  ;;  %v218_v9 = vsel %vm208_vm1, %v201_v8, -inf }
  0xda   :  { %219 = vmax.xlane.f32.xlu0 %v218_v9  ;;  %v274_v9 = vld [vmem:[#allocation3 + $0x1] sm:$0x1] }
 0x13e   :  { %v211_v13 = vpop.xlane.xlu1 %210 }
 0x13f   :  { %v221_v14 = vmax.f32 %v204_v12, %v211_v13 }
 0x141   :  { %v225_v15 = vsub.f32 %v204_v12, %v221_v14  ;;  %422 = vst.msk [vmem:[#allocation2] sm:$0x1] %vm46_vm0, %v221_v14  ;;  %239 = vperm.xlu0 %556, %v221_v14  }
 0x143   :  { %v229_v52 = vmul.f32 1.442695, %v225_v15 }
 0x145   :  { %v217_v17 = vpop.xlane.xlu0 %216 }
 0x146   :  { %v223_v19 = vmax.f32 %v206_v16, %v217_v17  ;;  %v214_v20 = vpop.xlane.xlu1 %213 }
 0x147   :  { %v222_v22 = vmax.f32 %v205_v18, %v214_v20 }
 0x148   :  { %v227_v21 = vsub.f32 %v206_v16, %v223_v19  ;;  %424 = vst.msk [vmem:[#allocation2 + $0x2] sm:$0x1] %vm46_vm0, %v223_v19  ;;  %251 = vperm.xlu2 %555, %v223_v19  }
 0x149   :  { %v226_v23 = vsub.f32 %v205_v18, %v222_v22  ;;  %423 = vst.msk [vmem:[#allocation2 + $0x1] sm:$0x1] %vm46_vm0, %v222_v22  ;;  %245 = vperm.xlu1 %557, %v222_v22  }
 0x14a   :  { %v233_v54 = vmul.f32 1.442695, %v227_v21 }
 0x14b   :  { %v231_v53 = vmul.f32 1.442695, %v226_v23 }
 0x14d   :  { %v220_v25 = vpop.xlane.xlu0 %219 }
 0x14e   :  { %v224_v26 = vmax.f32 %v207_v24, %v220_v25 }
 0x150   :  { %v228_v27 = vsub.f32 %v207_v24, %v224_v26  ;;  %425 = vst.msk [vmem:[#allocation2 + $0x3] sm:$0x1] %vm46_vm0, %v224_v26  ;;  %257 = vperm.xlu2 %555, %v224_v26   ;;  %v302_v24 = vld [vmem:[#allocation4] sm:$0x1] }
 0x152   :  { %v235_v57 = vmul.f32 1.442695, %v228_v27 }
 0x1a2   :  { %v252_v28 = vpop.permute.xlu2 %251 }
 0x1a3   :  { %v254_v29 = vperm.slane %v252_v28, 0 }
 0x1a5   :  { %v263_v30 = vsub.f32 %v181_v5, %v254_v29 }
 0x1a7   :  { %v269_v31 = vmul.f32 1.442695, %v263_v30 }
 0x1a9   :  { %558 = vpow2.f32 %v269_v31 }
 0x1aa   :  { %v258_v32 = vpop.permute.xlu2 %257 }
 0x1ab   :  { %v260_v33 = vperm.slane %v258_v32, 0 }
 0x1ad   :  { %v264_v34 = vsub.f32 %v201_v8, %v260_v33 }
 0x1af   :  { %v559_v35 = vpop.eup %558  ;;  %v271_v36 = vmul.f32 1.442695, %v264_v34 }
 0x1b0   :  { %390 = vmatmul.f32.vlgmr.msrb.gmra.mxu2 %v559_v35  ;;  %v287_v37 = vsel %vm208_vm1, %v559_v35, 0.0 }
 0x1b1   :  { %560 = vpow2.f32 %v271_v36  ;;  %288 = vadd.xlane.f32.xlu0 %v287_v37 }
 0x1b3   :  { %v240_v38 = vpop.permute.xlu0 %239 }
 0x1b4   :  { %v242_v39 = vperm.slane %v240_v38, 0  ;;  %v304_v38 = vld [vmem:[#allocation4 + $0x2] sm:$0x1] }
 0x1b6   :  { %v261_v41 = vsub.f32 %v951_v2, %v242_v39 }
 0x1b7   :  { %v561_v40 = vpop.eup %560 }
 0x1b8   :  { %410 = vmatmul.f32.vlgmr.msrb.gmra.mxu3 %v561_v40  ;;  %v265_v42 = vmul.f32 1.442695, %v261_v41  ;;  %v290_v51 = vsel %vm208_vm1, %v561_v40, 0.0 }
 0x1ba   :  { %562 = vpow2.f32 %v265_v42 }
 0x1bb   :  { %v246_v43 = vpop.permute.xlu1 %245 }
 0x1bc   :  { %v248_v44 = vperm.slane %v246_v43, 0 }
 0x1be   :  { %v262_v45 = vsub.f32 %v955_v4, %v248_v44 }
 0x1c0   :  { %v563_v46 = vpop.eup %562  ;;  %v267_v47 = vmul.f32 1.442695, %v262_v45 }
 0x1c1   :  { %350 = vmatmul.f32.vlgmr.msrb.gmra.mxu0 %v563_v46  ;;  %v281_v48 = vsel %vm208_vm1, %v563_v46, 0.0 }
 0x1c2   :  { %564 = vpow2.f32 %v267_v47  ;;  %282 = vadd.xlane.f32.xlu2 %v281_v48 }
 0x1c3   :  { %566 = vpow2.f32 %v229_v52 }
 0x1c4   :  { %568 = vpow2.f32 %v231_v53 }
 0x1c5   :  { %570 = vpow2.f32 %v233_v54 }
 0x1c6   :  { %572 = vpow2.f32 %v235_v57  ;;  %v303_v57 = vld [vmem:[#allocation4 + $0x1] sm:$0x1] }
 0x1c8   :  { %v565_v49 = vpop.eup %564 }
 0x1c9   :  { %370 = vmatmul.f32.vlgmr.msrb.gmra.mxu1 %v565_v49  ;;  %v284_v50 = vsel %vm208_vm1, %v565_v49, 0.0  ;;  %v567_v55 = vpop.eup %566 }
 0x1ca   :  { %285 = vadd.xlane.f32.xlu1 %v284_v50  ;;  %291 = vadd.xlane.f32.xlu2 %v290_v51  ;;  %v569_v56 = vpop.eup %568  ;;  %v277_v3 = vmul.f32 %v567_v55, %v273_v1 }
 0x1cb   :  { %v571_v58 = vpop.eup %570  ;;  %v278_v14 = vmul.f32 %v569_v56, %v274_v9 }
 0x1cc   :  { %v573_v59 = vpop.eup %572  ;;  %v279_v61 = vmul.f32 %v571_v58, %v275_v60 }
 0x1cd   :  { %v280_v15 = vmul.f32 %v573_v59, %v276_v10 }
 0x1e2   :  { %308 = vperm.xlu2 %555, %v567_v55  }
 0x1e3   :  { %314 = vperm.xlu1 %557, %v569_v56  }
 0x1ea   :  { %320 = vperm.xlu2 %555, %v571_v58  }
 0x1f2   :  { %326 = vperm.xlu2 %555, %v573_v59   ;;  %v305_v59 = vld [vmem:[#allocation4 + $0x3] sm:$0x1] }
 0x224   :  { %v289_v62 = vpop.xlane.xlu0 %288 }
 0x225   :  { %v295_v63 = vadd.f32 %v289_v62, %v279_v61 }
 0x227   :  { %300 = vst.msk [vmem:[#allocation3 + $0x2] sm:$0x1] %vm46_vm0, %v295_v63 }
 0x22e   :  { %v435_v0 = vld [vmem:[#allocation3 + $0x2] sm:$0x1] }
 0x22f   :  { %574 = vrcp.f32 %v435_v0  ;;  %v476_v8 = vand.u32 2147483648, %v435_v0  ;;  %v474_v12 = vand.u32 2147483647, %v435_v0  ;;  %vm470_vm3 = vweird.f32 %v435_v0 }
 0x231   :  { %v477_v16 = vor.u32 1.1754944e-38, %v476_v8  ;;  %vm475_vm5 = vcmp.eq.f32.partialorder %v474_v12, 8.507059e+37 }
 0x233   :  { %v391_v50 = vpop.f32.mrf.mxu2 }
 0x235   :  { %v575_v2 = vpop.eup %574  ;;  %v283_v4 = vpop.xlane.xlu2 %282 }
 0x236   :  { %v466_v5 = vmul.f32 %v575_v2, %v435_v0  ;;  %v293_v6 = vadd.f32 %v283_v4, %v277_v3  ;;  %vm471_vm2 = vweird.f32 %v575_v2 }
 0x237   :  { %vm472_vm4 = vmor %vm470_vm3, %vm471_vm2 }
 0x238   :  { %v467_v7 = vsub.f32 1.0, %v466_v5  ;;  %298 = vst.msk [vmem:[#allocation3] sm:$0x1] %vm46_vm0, %v293_v6 }
 0x23a   :  { %v468_v11 = vmul.f32 %v575_v2, %v467_v7 }
 0x23b   :  { %v411_v6 = vpop.f32.mrf.mxu3 }
 0x23c   :  { %v469_v13 = vadd.f32 %v575_v2, %v468_v11 }
 0x23d   :  { %v286_v17 = vpop.xlane.xlu1 %285  ;;  %v292_v18 = vpop.xlane.xlu2 %291 }
 0x23e   :  { %v473_v19 = vsel %vm472_vm4, %v575_v2, %v469_v13  ;;  %v294_v20 = vadd.f32 %v286_v17, %v278_v14  ;;  %v296_v21 = vadd.f32 %v292_v18, %v280_v15  ;;  %v351_v32 = vpop.f32.mrf.mxu0 }
 0x23f   :  { %v478_v22 = vsel %vm475_vm5, %v477_v16, %v473_v19  ;;  %v433_v23 = vld [vmem:[#allocation3] sm:$0x1] }
 0x240   :  { %507 = vperm.xlu1 %557, %v478_v22   ;;  %299 = vst.msk [vmem:[#allocation3 + $0x1] sm:$0x1] %vm46_vm0, %v294_v20  ;;  %576 = vrcp.f32 %v433_v23  ;;  %v448_v35 = vand.u32 2147483648, %v433_v23  ;;  %v446_v37 = vand.u32 2147483647, %v433_v23  ;;  %vm442_vm7 = vweird.f32 %v433_v23 }
 0x241   :  { %301 = vst.msk [vmem:[#allocation3 + $0x3] sm:$0x1] %vm46_vm0, %v296_v21 }
 0x242   :  { %v449_v43 = vor.u32 1.1754944e-38, %v448_v35  ;;  %vm447_vm9 = vcmp.eq.f32.partialorder %v446_v37, 8.507059e+37 }
 0x245   :  { %v309_v25 = vpop.permute.xlu2 %308 }
 0x246   :  { %v577_v26 = vpop.eup %576  ;;  %v311_v27 = vperm.slane %v309_v25, 0  ;;  %v371_v7 = vpop.f32.mrf.mxu1 }
 0x247   :  { %v438_v28 = vmul.f32 %v577_v26, %v433_v23  ;;  %v434_v29 = vld [vmem:[#allocation3 + $0x1] sm:$0x1]  ;;  %vm443_vm6 = vweird.f32 %v577_v26 }
 0x248   :  { %v330_v30 = vmul.f32 %v311_v27, %v302_v24  ;;  %578 = vrcp.f32 %v434_v29  ;;  %v979_v31 = vld [vmem:[#allocation3 + $0x3] sm:$0x1]  ;;  %vm444_vm8 = vmor %vm442_vm7, %vm443_vm6  ;;  %v462_v53 = vand.u32 2147483648, %v434_v29  ;;  %v460_v56 = vand.u32 2147483647, %v434_v29 }
 0x249   :  { %v439_v33 = vsub.f32 1.0, %v438_v28  ;;  %580 = vrcp.f32 %v979_v31  ;;  %vm456_vm11 = vweird.f32 %v434_v29  ;;  %v490_v11 = vand.u32 2147483648, %v979_v31 }
 0x24a   :  { %v414_v34 = vadd.f32 %v351_v32, %v330_v30  ;;  %v463_v1 = vor.u32 1.1754944e-38, %v462_v53  ;;  %vm461_vm13 = vcmp.eq.f32.partialorder %v460_v56, 8.507059e+37  ;;  %vm484_vm15 = vweird.f32 %v979_v31 }
 0x24b   :  { %v440_v36 = vmul.f32 %v577_v26, %v439_v33  ;;  %v488_v12 = vand.u32 2147483647, %v979_v31  ;;  %v491_v14 = vor.u32 1.1754944e-38, %v490_v11 }
 0x24c   :  { %418 = vst [vmem:[#allocation4] sm:$0x1] %v414_v34 }
 0x24d   :  { %v321_v39 = vpop.permute.xlu2 %320  ;;  %v441_v40 = vadd.f32 %v577_v26, %v440_v36  ;;  %vm489_vm1 = vcmp.eq.f32.partialorder %v488_v12, 8.507059e+37 }
 0x24e   :  { %v579_v41 = vpop.eup %578  ;;  %v323_v42 = vperm.slane %v321_v39, 0 }
 0x24f   :  { %v581_v44 = vpop.eup %580  ;;  %v445_v45 = vsel %vm444_vm8, %v577_v26, %v441_v40  ;;  %v452_v46 = vmul.f32 %v579_v41, %v434_v29  ;;  %vm457_vm10 = vweird.f32 %v579_v41 }
 0x250   :  { %v332_v47 = vmul.f32 %v323_v42, %v304_v38  ;;  %v450_v48 = vsel %vm447_vm9, %v449_v43, %v445_v45  ;;  %v480_v49 = vmul.f32 %v581_v44, %v979_v31  ;;  %vm458_vm12 = vmor %vm456_vm11, %vm457_vm10  ;;  %vm485_vm14 = vweird.f32 %v581_v44 }
 0x251   :  { %495 = vperm.xlu0 %556, %v450_v48   ;;  %v453_v51 = vsub.f32 1.0, %v452_v46  ;;  %vm486_vm0 = vmor %vm484_vm15, %vm485_vm14 }
 0x252   :  { %v416_v52 = vadd.f32 %v391_v50, %v332_v47  ;;  %v481_v54 = vsub.f32 1.0, %v480_v49 }
 0x253   :  { %v454_v55 = vmul.f32 %v579_v41, %v453_v51  ;;  %v429_v30 = vld [vmem:[#allocation4] sm:$0x1] }
 0x254   :  { %420 = vst [vmem:[#allocation4 + $0x2] sm:$0x1] %v416_v52  ;;  %v482_v62 = vmul.f32 %v581_v44, %v481_v54 }
 0x255   :  { %v315_v58 = vpop.permute.xlu1 %314  ;;  %v327_v60 = vpop.permute.xlu2 %326  ;;  %v455_v61 = vadd.f32 %v579_v41, %v454_v55 }
 0x256   :  { %v317_v63 = vperm.slane %v315_v58, 0  ;;  %v329_v0 = vperm.slane %v327_v60, 0  ;;  %v483_v8 = vadd.f32 %v581_v44, %v482_v62 }
 0x257   :  { %v459_v2 = vsel %vm458_vm12, %v579_v41, %v455_v61 }
 0x258   :  { %v331_v3 = vmul.f32 %v317_v63, %v303_v57  ;;  %v333_v4 = vmul.f32 %v329_v0, %v305_v59  ;;  %v464_v5 = vsel %vm461_vm13, %v463_v1, %v459_v2  ;;  %v487_v13 = vsel %vm486_vm0, %v581_v44, %v483_v8 }
 0x259   :  { %501 = vperm.xlu2 %555, %v464_v5   ;;  %v492_v15 = vsel %vm489_vm1, %v491_v14, %v487_v13 }
 0x25a   :  { %v415_v9 = vadd.f32 %v371_v7, %v331_v3  ;;  %v417_v10 = vadd.f32 %v411_v6, %v333_v4 }
 0x25b   :  { %v431_v18 = vld [vmem:[#allocation4 + $0x2] sm:$0x1] }
 0x25c   :  { %419 = vst [vmem:[#allocation4 + $0x1] sm:$0x1] %v415_v9 }
 0x25d   :  { %421 = vst [vmem:[#allocation4 + $0x3] sm:$0x1] %v417_v10 }
 0x261   :  { %513 = vperm.xlu2 %555, %v492_v15  }
 0x263   :  { %v430_v22 = vld [vmem:[#allocation4 + $0x1] sm:$0x1] }
 0x264   :  { %v432_v26 = vld [vmem:[#allocation4 + $0x3] sm:$0x1] }
 0x2b2   :  { %v508_v16 = vpop.permute.xlu1 %507 }
 0x2b3   :  { %v510_v17 = vperm.slane %v508_v16, 0  ;;  %v502_v19 = vpop.permute.xlu2 %501 }
 0x2b4   :  { %v504_v21 = vperm.slane %v502_v19, 0 }
 0x2b5   :  { %v519_v20 = vmul.f32 %v510_v17, %v431_v18 }
 0x2b6   :  { %v518_v23 = vmul.f32 %v504_v21, %v430_v22 }
 0x2b7   :  { %523 = vst [vmem:[#allocation10 + $0x2] sm:$0x1] %v519_v20 }
 0x2b8   :  { %522 = vst [vmem:[#allocation10 + $0x1] sm:$0x1] %v518_v23 }
 0x2bb   :  { %v514_v24 = vpop.permute.xlu2 %513 }
 0x2bc   :  { %v516_v25 = vperm.slane %v514_v24, 0 }
 0x2be   :  { %v520_v27 = vmul.f32 %v516_v25, %v432_v26 }
 0x2c0   :  { %524 = vst [vmem:[#allocation10 + $0x3] sm:$0x1] %v520_v27 }
 0x2c3   :  { %v496_v28 = vpop.permute.xlu0 %495 }
 0x2c4   :  { %v498_v29 = vperm.slane %v496_v28, 0 }
 0x2c6   :  { %v517_v31 = vmul.f32 %v498_v29, %v429_v30 }
 0x2c8   :  { %521 = vst [vmem:[#allocation10] sm:$0x1] %v517_v31 }
 0x2c9   :  { %537 = dma.vmem_to_hbm [thread:$0]  %s530_s1, 64, %s532_s23, [#allocation7], %s668_s24, %s668_s24, %s669_s25  }
 0x2ca   :  { %658 = dma.done.wait [#allocation7], 64  }
 0x2cb   :  { %659 = vsyncadd [#allocation7], 4294967232 }
 0x2cc   :  { %542 = vsyncpa [#allocation6], 1 }
 0x2cd   :  { %543 = vsyncpa [#allocation9], 1 }
 0x2ce   :  { %544 = vsyncpa [#allocation7], 1 }

</bundles_post_ra>
